<compile_context>
chip_gen: v6e
topology: v6e:2x2x1
jax: 0.10.0
libtpu: 0.0.40
codegen_flags: <defaults>
</compile_context>

<pallas_src>
import functools

import jax
import jax.numpy as jnp
from jax import lax
from jax.experimental import pallas as pl
from jax.experimental.pallas import tpu as pltpu


def _rup(n, m):
    return -(-n // m) * m


def _cdiv(a, b):
    return -(-a // b)


def _vmem_capacity_bytes():
    try:
        return int(pltpu.get_tpu_info().vmem_capacity_bytes)
    except Exception:
        return 64 << 20  # most conservative current generation (v7x, per-TC)


def _block_vmem_bytes(b_tile, l_pad, in_dim, att_dim, x_bytes):
    """Real per-step VMEM footprint: lane/sublane padded, double-buffered."""
    m = b_tile * l_pad
    x_blk = _rup(m, 8) * _rup(in_dim, 128) * x_bytes
    w_blk = _rup(in_dim, 8) * _rup(att_dim, 128) * x_bytes
    h_blk = 8 * _rup(att_dim, 128) * 4
    o_blk = _rup(b_tile, 8) * _rup(l_pad, 128) * 4
    s_blk = _rup(m, 8) * _rup(att_dim, 128) * 4  # live f32 scores intermediate
    # Pallas double-buffers every BlockSpec operand by default.
    return 2 * (x_blk + w_blk + h_blk + o_blk) + s_blk


def _choose_b_tile(B, l_pad, in_dim, att_dim, x_bytes, budget_bytes):
    whole = _block_vmem_bytes(B, l_pad, in_dim, att_dim, x_bytes)
    x_total = _rup(B * l_pad, 8) * _rup(in_dim, 128) * x_bytes
    if whole <= budget_bytes and x_total <= (2 << 20):
        # Tiny problem: one grid step; fixed pallas_call / per-step overhead
        # dominates and there is nothing worth pipelining.
        return B
    if B < 8:
        # TODO(synk): batch too small to tile by the 8-row sublane granule;
        # splitting over L instead would need an online softmax.
        return B
    # Largest 8-aligned tile whose blocks fit the budget.
    bt = 8
    while bt + 8 <= B and _block_vmem_bytes(
            bt + 8, l_pad, in_dim, att_dim, x_bytes) <= budget_bytes:
        bt += 8
    # Keep >= 4 grid steps once the x stream is large: with a single step the
    # whole HBM->VMEM x DMA is exposed; with several steps double-buffering
    # hides it behind compute/writeback (per-step overhead ~0.35 us is noise).
    steps = _cdiv(B, bt)
    if x_total > (4 << 20) and steps < 4:
        bt = max(8, _rup(_cdiv(B, 4), 8))
        steps = _cdiv(B, bt)
    # Prefer an even step count so the "parallel" batch axis shards across
    # both v7x TensorCores.
    if steps > 1 and steps % 2:
        bt_even = max(8, _rup(_cdiv(B, steps + 1), 8))
        if _block_vmem_bytes(bt_even, l_pad, in_dim, att_dim, x_bytes) <= budget_bytes:
            bt = bt_even
    # Safety: the roundings above must never push past the budget.
    while bt > 8 and _block_vmem_bytes(bt, l_pad, in_dim, att_dim, x_bytes) > budget_bytes:
        bt -= 8
    return bt


def _att_layer_kernel(x_ref, w_ref, h_ref, out_ref, *, valid_len):
    # x_ref  : (b_tile * l_pad, in_dim)  flattened rows of this batch tile
    # w_ref  : (in_dim, att_dim)
    # h_ref  : (1, att_dim)  (f32)
    # out_ref: (b_tile, l_pad)
    b_tile, l_pad = out_ref.shape
    att_dim = w_ref.shape[-1]

    # One fused projection matmul on the MXU (M = b_tile * l_pad, f32 accum).
    s = jnp.dot(x_ref[...], w_ref[...], preferred_element_type=jnp.float32)
    s = jnp.maximum(s, 0.0)                               # ReLU

    # Multiply by h and reduce over att_dim -> one score per row. The reshape
    # is layout-free because l_pad % 8 == 0 (enforced by the wrapper).
    s3 = s.reshape(b_tile, l_pad, att_dim)
    z = jnp.sum(s3 * h_ref[...], axis=-1)                 # (b_tile, l_pad)

    if valid_len != l_pad:
        # Mask wrapper-side L padding out of the softmax.
        col = lax.broadcasted_iota(jnp.int32, (b_tile, l_pad), 1)
        z = jnp.where(col < valid_len, z, -jnp.inf)

    # Numerically-stable softmax over L.
    z = z - jnp.max(z, axis=-1, keepdims=True)
    e = jnp.exp(z)
    denom = jnp.sum(e, axis=-1, keepdims=True)
    inv = pl.reciprocal(denom, approx=True)               # EUP slot (~free)
    inv = inv * (2.0 - denom * inv)                       # one Newton step -> full precision
    out_ref[...] = (e * inv).astype(out_ref.dtype)


def att_layer(infeatures, w_t, h, *, compute_dtype=None, b_tile=None):
    """AttLayer forward.

    infeatures: [B, L, in_dim]   w_t: [in_dim, att_dim]   h: [att_dim]
    compute_dtype: optional (e.g. jnp.bfloat16) to halve HBM traffic on x/w.
    Returns softmax attention weights [B, L] (float32).
    """
    # TODO(synk): inputs with more than 3 dims ("[batch, XXX..., embed]") should
    # have their middle dims flattened by the caller before this wrapper.
    B, L, in_dim = infeatures.shape
    att_dim = w_t.shape[1]

    if compute_dtype is not None:
        infeatures = infeatures.astype(compute_dtype)
        w_t = w_t.astype(compute_dtype)
    x_bytes = jnp.dtype(infeatures.dtype).itemsize

    # Pad L to the sublane tile so the in-kernel reshape is layout-free.
    l_pad = _rup(L, 8)

    vmem_cap = _vmem_capacity_bytes()
    budget = min(max(vmem_cap // 4, 8 << 20), 48 << 20)   # ~16 MiB v7x, ~32 MiB v5e/v6e

    if b_tile is None:
        b_tile = _choose_b_tile(B, l_pad, in_dim, att_dim, x_bytes, budget)
    elif b_tile != B and b_tile % 8 != 0:
        raise ValueError("b_tile override must be a multiple of 8 or equal to B")
    b_pad = _cdiv(B, b_tile) * b_tile

    x = infeatures
    if b_pad != B or l_pad != L:
        x = jnp.pad(x, ((0, b_pad - B), (0, l_pad - L), (0, 0)))
    # Fold the batch into the matmul M-dim (free row-major reshape outside).
    x2 = x.reshape(b_pad * l_pad, in_dim)
    h2 = h.astype(jnp.float32).reshape(1, att_dim)

    grid = (b_pad // b_tile,)
    needed = _block_vmem_bytes(b_tile, l_pad, in_dim, att_dim, x_bytes)
    vmem_limit = int(min(max(needed + (8 << 20), 32 << 20),
                         max(vmem_cap * 3 // 4, 32 << 20)))

    grid_spec = pltpu.PrefetchScalarGridSpec(
        num_scalar_prefetch=0,
        grid=grid,
        in_specs=[
            pl.BlockSpec((b_tile * l_pad, in_dim), lambda i: (i, 0)),
            pl.BlockSpec((in_dim, att_dim), lambda i: (0, 0)),
            pl.BlockSpec((1, att_dim), lambda i: (0, 0)),
        ],
        out_specs=pl.BlockSpec((b_tile, l_pad), lambda i: (i, 0)),
    )

    out = pl.pallas_call(
        functools.partial(_att_layer_kernel, valid_len=L),
        grid_spec=grid_spec,
        out_shape=jax.ShapeDtypeStruct((b_pad, l_pad), jnp.float32),
        compiler_params=pltpu.CompilerParams(
            dimension_semantics=("parallel",),
            vmem_limit_bytes=vmem_limit),
    )(x2, w_t, h2)

    if b_pad != B or l_pad != L:
        out = out[:B, :L]
    return out


def att_layer_ref(infeatures, w_t, h):
    """Pure-JAX reference mirroring the PyTorch forward."""
    s = jnp.maximum(infeatures.astype(jnp.float32) @ w_t.astype(jnp.float32), 0.0)
    z = jnp.sum(s * h, axis=-1)
    return jax.nn.softmax(z, axis=-1)


if __name__ == "__main__":
    # Module config: in_dim=32, att_dim=32; input [B, L, in_dim] = [2, 8, 32].
    in_dim, att_dim = 32, 32

    key = jax.random.PRNGKey(0)
    kx, kw, kh = jax.random.split(key, 3)

    # PyTorch Linear weight is [att_dim, in_dim]; pass the transpose.
    w = (jax.random.normal(kw, (att_dim, in_dim)) * 0.1).astype(jnp.float32)
    w_t = w.T
    h = jax.random.normal(kh, (att_dim,), dtype=jnp.float32)

    # 1) Base f32 case.
    B, L = 2, 8
    x = jax.random.normal(kx, (B, L, in_dim), dtype=jnp.float32)
    out = att_layer(x, w_t, h)
    jax.block_until_ready(out)
    ref = att_layer_ref(x, w_t, h)
    assert jnp.allclose(out, ref, atol=1e-5, rtol=1e-5), float(jnp.max(jnp.abs(out - ref)))
    assert jnp.allclose(jnp.sum(out, axis=-1), 1.0, atol=1e-5)

    # 2) bf16 compute path (halves HBM bytes on the binding x stream).
    out_bf16 = att_layer(x, w_t, h, compute_dtype=jnp.bfloat16)
    jax.block_until_ready(out_bf16)
    assert jnp.allclose(out_bf16, ref, atol=5e-2)
    assert jnp.allclose(jnp.sum(out_bf16, axis=-1), 1.0, atol=1e-3)

    # 3) L not a multiple of 8 -> wrapper pads L and the kernel masks it.
    B2, L2 = 10, 6
    x2 = jax.random.normal(jax.random.PRNGKey(1), (B2, L2, in_dim), dtype=jnp.float32)
    out2 = att_layer(x2, w_t, h)
    jax.block_until_ready(out2)
    ref2 = att_layer_ref(x2, w_t, h)
    assert out2.shape == (B2, L2)
    assert jnp.allclose(out2, ref2, atol=1e-5, rtol=1e-5)

    # 4) Tiled path: B not a multiple of the tile -> batch padding + grid=(3,).
    B3, L3 = 20, 8
    x3 = jax.random.normal(jax.random.PRNGKey(2), (B3, L3, in_dim), dtype=jnp.float32)
    out3 = att_layer(x3, w_t, h, b_tile=8)
    jax.block_until_ready(out3)
    ref3 = att_layer_ref(x3, w_t, h)
    assert out3.shape == (B3, L3)
    assert jnp.allclose(out3, ref3, atol=1e-5, rtol=1e-5)

    print("KERNEL_OK")
</pallas_src>

<mosaic_0001>
module attributes {stable_mosaic.version = 11 : i64} {
  func.func @_att_layer_kernel(%arg0: i32, %arg1: memref<16x32xf32, #tpu.memory_space<vmem>>, %arg2: memref<32x32xf32, #tpu.memory_space<vmem>>, %arg3: memref<1x32xf32, #tpu.memory_space<vmem>>, %arg4: memref<2x8xf32, #tpu.memory_space<vmem>>) attributes {dimension_semantics = [#tpu.dimension_semantics<parallel>], iteration_bounds = array<i64: 1>, scalar_prefetch = 0 : i64, scratch_operands = 0 : i64, tpu.core_type = #tpu.core_type<tc>, window_params = [{transform_indices = @transform_0, window_bounds = array<i64: 16, 32>}, {pipeline_mode = #tpu.pipeline_mode<synchronous>, transform_indices = @transform_1, window_bounds = array<i64: 32, 32>}, {pipeline_mode = #tpu.pipeline_mode<synchronous>, transform_indices = @transform_2, window_bounds = array<i64: 1, 32>}, {transform_indices = @transform_3, window_bounds = array<i64: 2, 8>}]} {
    %c0 = arith.constant 0 : index
    %c0_0 = arith.constant 0 : index
    %0 = vector.load %arg1[%c0, %c0_0] : memref<16x32xf32, #tpu.memory_space<vmem>>, vector<16x32xf32>
    %c0_1 = arith.constant 0 : index
    %c0_2 = arith.constant 0 : index
    %1 = vector.load %arg2[%c0_1, %c0_2] : memref<32x32xf32, #tpu.memory_space<vmem>>, vector<32x32xf32>
    %cst = arith.constant dense<0.000000e+00> : vector<16x32xf32>
    %2 = tpu.matmul %0, %1, %cst {dimension_numbers = #tpu.dot_dimension_numbers<[1], [0], [0], [1], [0, 0, 1, 1], [], []>} : vector<16x32xf32>, vector<32x32xf32>, vector<16x32xf32> -> vector<16x32xf32>
    %cst_3 = arith.constant 0.000000e+00 : f32
    %3 = vector.broadcast %cst_3 : f32 to vector<16x32xf32>
    %4 = arith.maximumf %2, %3 : vector<16x32xf32>
    %5 = vector.shape_cast %4 : vector<16x32xf32> to vector<2x8x32xf32>
    %c0_4 = arith.constant 0 : index
    %c0_5 = arith.constant 0 : index
    %6 = vector.load %arg3[%c0_4, %c0_5] : memref<1x32xf32, #tpu.memory_space<vmem>>, vector<1x32xf32>
    %7 = vector.shape_cast %6 : vector<1x32xf32> to vector<1x1x32xf32>
    %8 = vector.broadcast %7 : vector<1x1x32xf32> to vector<2x8x32xf32>
    %9 = arith.mulf %5, %8 : vector<2x8x32xf32>
    %cst_6 = arith.constant dense<0.000000e+00> : vector<2x8xf32>
    %10 = vector.multi_reduction <add>, %9, %cst_6 [2] : vector<2x8x32xf32> to vector<2x8xf32>
    %cst_7 = arith.constant dense<0xFF800000> : vector<2xf32>
    %11 = vector.multi_reduction <maximumf>, %10, %cst_7 [1] : vector<2x8xf32> to vector<2xf32>
    %12 = vector.shape_cast %11 : vector<2xf32> to vector<2x1xf32>
    %13 = vector.broadcast %12 : vector<2x1xf32> to vector<2x8xf32>
    %14 = arith.subf %10, %13 : vector<2x8xf32>
    %15 = math.exp %14 : vector<2x8xf32>
    %cst_8 = arith.constant dense<0.000000e+00> : vector<2xf32>
    %16 = vector.multi_reduction <add>, %15, %cst_8 [1] : vector<2x8xf32> to vector<2xf32>
    %17 = vector.shape_cast %16 : vector<2xf32> to vector<2x1xf32>
    %18 = tpu.reciprocal %17 {approx = true} : vector<2x1xf32> -> vector<2x1xf32>
    %19 = arith.mulf %17, %18 : vector<2x1xf32>
    %cst_9 = arith.constant 2.000000e+00 : f32
    %20 = vector.broadcast %cst_9 : f32 to vector<2x1xf32>
    %21 = arith.subf %20, %19 : vector<2x1xf32>
    %22 = arith.mulf %18, %21 : vector<2x1xf32>
    %23 = vector.broadcast %22 : vector<2x1xf32> to vector<2x8xf32>
    %24 = arith.mulf %15, %23 : vector<2x8xf32>
    %c0_10 = arith.constant 0 : index
    %c0_11 = arith.constant 0 : index
    %25 = vector.load %arg4[%c0_10, %c0_11] : memref<2x8xf32, #tpu.memory_space<vmem>>, vector<2x8xf32>
    tpu.vector_store %arg4[%c0_10, %c0_11], %24 {strides = array<i32>} : memref<2x8xf32, #tpu.memory_space<vmem>>, vector<2x8xf32>,
    return
  }
  func.func @transform_0(%arg0: i32) -> (i32, i32) {
    %c0_i32 = arith.constant 0 : i32
    %c0_i32_0 = arith.constant 0 : i32
    return %arg0, %c0_i32 : i32, i32
  }
  func.func @transform_1(%arg0: i32) -> (i32, i32) {
    %c0_i32 = arith.constant 0 : i32
    %c0_i32_0 = arith.constant 0 : i32
    %c0_i32_1 = arith.constant 0 : i32
    return %c0_i32, %c0_i32_0 : i32, i32
  }
  func.func @transform_2(%arg0: i32) -> (i32, i32) {
    %c0_i32 = arith.constant 0 : i32
    %c0_i32_0 = arith.constant 0 : i32
    %c0_i32_1 = arith.constant 0 : i32
    return %c0_i32, %c0_i32_0 : i32, i32
  }
  func.func @transform_3(%arg0: i32) -> (i32, i32) {
    %c0_i32 = arith.constant 0 : i32
    %c0_i32_0 = arith.constant 0 : i32
    return %arg0, %c0_i32 : i32, i32
  }
}

</mosaic_0001>

<bundles_post_ra>
// kernel: tpu_custom_call.1
= control target key start
LH: loop header
LB: loop body
LE: loop exit
PB: predicated region body
PF: predicated region fallthrough
CT: control target
= control target key end

     0   :  { %8 = vsyncpa [#allocation3], 0  ;;  %s405_s0 = inlined_call_operand.hbm [shape: f32[16,32], index: 0, kind: input, shape index: {}]   ;;  %s406_s1 = inlined_call_operand.hbm [shape: f32[32,32], index: 1, kind: input, shape index: {}]   ;;  %s407_s2 = inlined_call_operand.vmem [shape: f32[1,32], index: 2, kind: input, shape index: {}]   ;;  %s408_s3 = inlined_call_operand.hbm [shape: f32[2,8], index: 3, kind: output, shape index: {}]  }
   0x1   :  { %9 = vsyncpa [#allocation6], 0 }
   0x2   :  { %10 = vsyncpa [#allocation4], 0  ;;  %s357_s12 = smov [#allocation2]  }
   0x3   :  { %s16_s13 = sshll.u32 %s357_s12, 4  ;;  %s17_s13 = int_to_ptr.vmem [resolvable:$true] %s16_s13 }
   0x4   :  { %s299_s14 = scalar_lea.vmem %s17_s13, 256  ;;  %p304_p1 = scmp.lt.s32.totalorder %s17_s13, %s17_s13 }
   0x5   :  { %p300_p0 = scmp.ne.s32.totalorder %s17_s13, %s299_s14  ;;  %p305_p2 = scmp.lt.s32.totalorder %s299_s14, %s299_s14 }
   0x7   :  { %p306_p3 = por %p305_p2, %p304_p1 }
   0x9   :  { %p307_p4 = pnand %p306_p3, %p300_p0 }
   0xb   :  { %310 = shalt.err (!%p307_p4)
}
   0xc   :  { %s358_s15 = smov 128   ;;  %s359_s16 = smov 8  }
   0xd   :  { %22 = dma.hbm_to_vmem [thread:$0]  %s405_s0, 256, %s17_s13, [#allocation3], %s358_s15, %s358_s15, %s359_s16  }
   0xe   :  { %s360_s19 = smov [#allocation5]  }
   0xf   :  { %s28_s20 = sshll.u32 %s360_s19, 4  ;;  %s29_s20 = int_to_ptr.vmem [resolvable:$true] %s28_s20 }
  0x10   :  { %s319_s21 = scalar_lea.vmem %s29_s20, 512  ;;  %p324_p6 = scmp.lt.s32.totalorder %s29_s20, %s29_s20 }
  0x11   :  { %p320_p5 = scmp.ne.s32.totalorder %s29_s20, %s319_s21  ;;  %p325_p7 = scmp.lt.s32.totalorder %s319_s21, %s319_s21 }
  0x13   :  { %p326_p8 = por %p325_p7, %p324_p6 }
  0x15   :  { %p327_p9 = pnand %p326_p8, %p320_p5 }
  0x17   :  { %330 = shalt.err (!%p327_p9)
}
  0x18   :  { %34 = dma.hbm_to_vmem [thread:$0]  %s406_s1, 512, %s29_s20, [#allocation6], %s358_s15, %s358_s15, %s359_s16  }
  0x19   :  { %351 = dma.done.wait [#allocation3], 256  }
  0x1a   :  { %352 = vsyncadd [#allocation3], 4294967040 }
  0x1b   :  { %353 = dma.done.wait [#allocation6], 512  }
  0x1c   :  { %354 = vsyncadd [#allocation6], 4294966784  ;;  %vm49_vm0 = vcmask 261120   ;;  %v48_v0 = vld [vmem:[#allocation5 + $0x18] sm:$0xff]  ;;  %v47_v1 = vld [vmem:[#allocation5 + $0x10] sm:$0xff]  ;;  %v150_v15 = vlaneseq  ;;  %vm160_vm1 = vcmask 1041409  }
  0x1d   :  { %266 = vmatprep.subr.mxu0 %v48_v0  ;;  %v43_v2 = vld [vmem:[#allocation2] sm:$0xff]  ;;  %v46_v3 = vld [vmem:[#allocation5 + $0x8] sm:$0xff]  ;;  %v45_v4 = vld [vmem:[#allocation5] sm:$0xff]  ;;  %vm163_vm2 = vcmask 58368   ;;  %v361_v25 = vmov 0  }
  0x1e   :  { %267 = vmatpush3.msra.mxu0 %v48_v0  ;;  %274 = vmatprep.mubr.msk.f32.mxu0 %vm49_vm0, %v43_v2  ;;  %v44_v5 = vld [vmem:[#allocation2 + $0x8] sm:$0xff]  ;;  %v259_v10 = vld [vmem:[%s407_s2] ss:$0 sm:$0xff]  ;;  %v151_v16 = vand.u32 127, %v150_v15  ;;  %v153_v17 = vshrl.u32 %v150_v15, 7  ;;  %s362_s2 = smov [#allocation7]  }
  0x1f   :  { %268 = vmatprep.subr.mxu0 %v47_v1  ;;  %284 = vset.pattern.permute.xlu0 %v361_v25  ;;  %s247_s24 = sshll.u32 %s362_s2, 4  ;;  %s248_s24 = int_to_ptr.vmem [resolvable:$true] %s247_s24 }
  0x20   :  { %269 = vmatpush3.msra.mxu0 %v47_v1  ;;  %v154_v19 = vsub.s32 %v151_v16, %v153_v17  ;;  %283 = vset.pattern.permute.xlu1 %v361_v25  ;;  %v170_v26 = vsub.s32 0, %v153_v17  ;;  %v174_v27 = vsub.s32 1, %v153_v17  ;;  %s331_s25 = scalar_lea.vmem %s248_s24, 32  ;;  %p336_p11 = scmp.lt.s32.totalorder %s248_s24, %s248_s24 }
  0x21   :  { %270 = vmatprep.subr.mxu0 %v46_v3  ;;  %p332_p10 = scmp.ne.s32.totalorder %s248_s24, %s331_s25  ;;  %p337_p12 = scmp.lt.s32.totalorder %s331_s25, %s331_s25 }
  0x22   :  { %271 = vmatpush3.msra.mxu0 %v46_v3 }
  0x23   :  { %272 = vmatprep.subr.mxu0 %v45_v4  ;;  %p338_p13 = por %p337_p12, %p336_p11 }
  0x24   :  { %273 = vmatpush3.msra.mxu0 %v45_v4 }
  0x25   :  { %275 = vmatmul.mubr.msk.f32.vlgmr.msra.gmra.mxu0 %vm49_vm0, %v44_v5  ;;  %p339_p0 = pnand %p338_p13, %p332_p10 }
  0xe5   :  { %v276_v6 = vpop.f32.mrf.mxu0 }
  0xe6   :  { %v132_v8 = vmax.f32 %v276_v6, 0.0 }
  0xe7   :  { %v122_v7 = vpop.f32.mrf.mxu0 }
  0xe8   :  { %v131_v9 = vmax.f32 %v122_v7, 0.0  ;;  %v141_v13 = vmul.f32 %v259_v10, %v132_v8 }
  0xea   :  { %v140_v11 = vmul.f32 %v259_v10, %v131_v9  ;;  %v145_v14 = vsel %vm49_vm0, %v141_v13, 0.0 }
  0xec   :  { %v142_v12 = vsel %vm49_vm0, %v140_v11, 0.0 }
  0xed   :  { %143 = vadd.xlane.f32.xlu0 %v142_v12 }
  0xf1   :  { %146 = vadd.xlane.f32.xlu0 %v145_v14 }
 0x176   :  { %v144_v18 = vpop.xlane.xlu0 %143 }
 0x177   :  { %v155_v21 = vrot.slane %v144_v18, %v154_v19 }
 0x17a   :  { %v147_v20 = vpop.xlane.xlu0 %146 }
 0x17b   :  { %v159_v22 = vrot.slane %v147_v20, %v154_v19 }
 0x17d   :  { %v161_v23 = vsel %vm160_vm1, %v159_v22, %v155_v21 }
 0x17e   :  { %v164_v24 = vsel %vm163_vm2, %v161_v23, -inf }
 0x17f   :  { %165 = vmax.xlane.f32.xlu1 %v164_v24 }
 0x208   :  { %v166_v28 = vpop.xlane.xlu1 %165 }
 0x209   :  { %v171_v29 = vrot.slane %v166_v28, %v170_v26  ;;  %v175_v30 = vrot.slane %v166_v28, %v174_v27 }
 0x20b   :  { %v178_v31 = vsub.f32 %v144_v18, %v171_v29  ;;  %v179_v32 = vsub.f32 %v147_v20, %v175_v30 }
 0x20d   :  { %v180_v33 = vmul.f32 1.442695, %v178_v31  ;;  %v182_v34 = vmul.f32 1.442695, %v179_v32 }
 0x20f   :  { %285 = vpow2.f32 %v180_v33 }
 0x210   :  { %287 = vpow2.f32 %v182_v34 }
 0x21c   :  { %v286_v35 = vpop.eup %285 }
 0x21d   :  { %v288_v36 = vpop.eup %287  ;;  %187 = vperm.xlu1 %283, %v286_v35  }
 0x21e   :  { %190 = vperm.xlu0 %284, %v288_v36  }
 0x298   :  { %v188_v37 = vpop.permute.xlu1 %187 }
 0x299   :  { %v191_v38 = vpop.permute.xlu0 %190  ;;  %v195_v39 = vrot.slane %v188_v37, %v154_v19 }
 0x29a   :  { %v199_v40 = vrot.slane %v191_v38, %v154_v19 }
 0x29c   :  { %v200_v41 = vsel %vm160_vm1, %v199_v40, %v195_v39 }
 0x29d   :  { %v202_v42 = vsel %vm163_vm2, %v200_v41, 0.0 }
 0x29e   :  { %203 = vadd.xlane.f32.xlu1 %v202_v42 }
 0x327   :  { %v204_v43 = vpop.xlane.xlu1 %203 }
 0x328   :  { %289 = vrcp.f32 %v204_v43 }
 0x335   :  { %v290_v44 = vpop.eup %289 }
 0x336   :  { %v206_v45 = vmul.f32 %v290_v44, %v204_v43 }
 0x338   :  { %v207_v46 = vsub.f32 2.0, %v206_v45 }
 0x33a   :  { %v208_v47 = vmul.f32 %v290_v44, %v207_v46 }
 0x33c   :  { %v213_v48 = vrot.slane %v208_v47, %v170_v26  ;;  %v217_v49 = vrot.slane %v208_v47, %v174_v27 }
 0x33e   :  { %v220_v50 = vmul.f32 %v286_v35, %v213_v48  ;;  %v221_v51 = vmul.f32 %v288_v36, %v217_v49 }
 0x340   :  { %225 = vperm.xlu0 %284, %v220_v50  }
 0x344   :  { %228 = vperm.xlu0 %284, %v221_v51  }
 0x3bb   :  { %v226_v52 = vpop.permute.xlu0 %225 }
 0x3bc   :  { %v233_v54 = vrot.slane %v226_v52, %v154_v19 }
 0x3bf   :  { %v229_v53 = vpop.permute.xlu0 %228 }
 0x3c0   :  { %v237_v55 = vrot.slane %v229_v53, %v154_v19 }
 0x3c2   :  { %v238_v56 = vsel %vm160_vm1, %v237_v55, %v233_v54 }
 0x3c3   :  { %240 = vst.msk [vmem:[#allocation7] sm:$0x3] %vm163_vm2, %v238_v56 }
 0x3c4   :  { %342 = shalt.err (!%p339_p0)
}
 0x3c5   :  { %250 = dma.vmem_to_hbm [thread:$0]  %s248_s24, 32, %s408_s3, [#allocation4]  }
 0x3c6   :  { %355 = dma.done.wait [#allocation4], 32  }
 0x3c7   :  { %356 = vsyncadd [#allocation4], 4294967264 }
 0x3c8   :  { %254 = vsyncpa [#allocation3], 1 }
 0x3c9   :  { %255 = vsyncpa [#allocation6], 1 }
 0x3ca   :  { %256 = vsyncpa [#allocation4], 1 }

</bundles_post_ra>
